<compile_context>
chip_gen: v7x
topology: tpu7x:2x2x1
jax: 0.10.0
libtpu: 0.0.40
codegen_flags: <defaults>
</compile_context>

<pallas_src>
import functools

import jax
import jax.numpy as jnp
from jax.experimental import pallas as pl
from jax.experimental.pallas import tpu as pltpu


def _align8(n: int) -> int:
    return ((n + 7) // 8) * 8


def pack_params(w1, b1, w2, b2):
    """Pack W1/b1/W2/b2 into one (rows, cols) f32 slab with 8-aligned sections.

    Returns (params, (row_w1, row_b1, row_w2, row_b2)).
    Sections start on multiples of 8 rows so in-kernel static slices never
    straddle sublane tiles.
    """
    in_dim, neurons = w1.shape
    out_dim = w2.shape[1]
    cols = max(neurons, out_dim)

    r_w1 = 0
    r_b1 = _align8(in_dim)
    r_w2 = r_b1 + 8
    r_b2 = r_w2 + _align8(neurons)
    rows = r_b2 + 8

    params = jnp.zeros((rows, cols), jnp.float32)
    params = params.at[r_w1:r_w1 + in_dim, 0:neurons].set(w1)
    params = params.at[r_b1:r_b1 + 1, 0:neurons].set(b1.reshape(1, neurons))
    params = params.at[r_w2:r_w2 + neurons, 0:out_dim].set(w2)
    params = params.at[r_b2:r_b2 + 1, 0:out_dim].set(b2.reshape(1, out_dim))
    return params, (r_w1, r_b1, r_w2, r_b2)


def _fused_mlp_kernel(x_ref, p_ref, o_ref, *, dims, offs):
    """x_ref: (tile_b, in_dim); p_ref: packed params; o_ref: (tile_b, out_dim)."""
    in_dim, neurons, out_dim = dims
    r_w1, r_b1, r_w2, r_b2 = offs

    # Static slices of the packed parameter slab (zero-cost views).
    w1 = p_ref[r_w1:r_w1 + in_dim, 0:neurons]
    b1 = p_ref[r_b1:r_b1 + 1, 0:neurons]
    w2 = p_ref[r_w2:r_w2 + neurons, 0:out_dim]
    b2 = p_ref[r_b2:r_b2 + 1, 0:out_dim]

    # layer1 -> tanh, layer3 -> 7 * tanh.  MXU accumulates in f32.
    h = jnp.tanh(jnp.dot(x_ref[...], w1, preferred_element_type=jnp.float32) + b1)
    y = jnp.dot(h, w2, preferred_element_type=jnp.float32) + b2
    o_ref[...] = 7.0 * jnp.tanh(y)


def tiny_tanh_nn(obs, w1, b1, w2, b2, *, tile_b=512):
    """Fused forward of tinytanhNN.

    obs: (B, in_dim) f32
    w1:  (in_dim, neurons) f32   b1: (1, neurons) f32
    w2:  (neurons, out_dim) f32  b2: (1, out_dim) f32
    returns (B, out_dim) f32
    """
    B, in_dim = obs.shape
    neurons = w1.shape[1]
    out_dim = w2.shape[1]

    # Single packed parameter operand -> 2 input DMAs instead of 5.
    # (Under jit with fixed params this packing is hoisted/constant-folded.)
    params, offs = pack_params(w1, b1, w2, b2)

    kernel = functools.partial(
        _fused_mlp_kernel, dims=(in_dim, neurons, out_dim), offs=offs)

    cost = pl.CostEstimate(
        flops=2 * B * (in_dim * neurons + neurons * out_dim),
        transcendentals=B * (neurons + out_dim),
        bytes_accessed=4 * (B * in_dim + int(params.size) + B * out_dim),
    )

    if B <= tile_b:
        # Tiny problem: everything fits in VMEM as whole arrays.  No grid at
        # all -> no per-step grid bookkeeping, just two input DMAs + compute.
        return pl.pallas_call(
            kernel,
            out_shape=jax.ShapeDtypeStruct((B, out_dim), jnp.float32),
            in_specs=[
                pl.BlockSpec(memory_space=pltpu.MemorySpace.VMEM),
                pl.BlockSpec(memory_space=pltpu.MemorySpace.VMEM),
            ],
            out_specs=pl.BlockSpec(memory_space=pltpu.MemorySpace.VMEM),
            cost_estimate=cost,
        )(obs, params)

    # Large-batch path: tile the batch on a grid.  Weights are a full block
    # whose index_map is constant, so they stay VMEM-resident across steps;
    # obs/out tiles are double-buffered by the BlockSpec pipeline.  The batch
    # axis is "parallel" so it can be sharded across TensorCores.
    tile_b = _align8(tile_b)
    b_pad = ((B + tile_b - 1) // tile_b) * tile_b
    obs_p = obs if b_pad == B else jnp.pad(obs, ((0, b_pad - B), (0, 0)))

    out = pl.pallas_call(
        kernel,
        out_shape=jax.ShapeDtypeStruct((b_pad, out_dim), jnp.float32),
        grid=(b_pad // tile_b,),
        in_specs=[
            pl.BlockSpec((tile_b, in_dim), lambda i: (i, 0)),
            pl.BlockSpec(params.shape, lambda i: (0, 0)),  # VMEM-resident params
        ],
        out_specs=pl.BlockSpec((tile_b, out_dim), lambda i: (i, 0)),
        compiler_params=pltpu.CompilerParams(
            dimension_semantics=("parallel",),
        ),
        cost_estimate=cost,
    )(obs_p, params)
    return out[:B]


def init_params(key, in_dim, out_dim, neurons):
    """Deterministic init matching nn.Linear's U(-1/sqrt(fan_in), 1/sqrt(fan_in))."""
    k1, k2, k3, k4 = jax.random.split(key, 4)
    bound1 = 1.0 / jnp.sqrt(in_dim)
    bound2 = 1.0 / jnp.sqrt(neurons)
    w1 = jax.random.uniform(k1, (in_dim, neurons), jnp.float32, -bound1, bound1)
    b1 = jax.random.uniform(k2, (1, neurons), jnp.float32, -bound1, bound1)
    w2 = jax.random.uniform(k3, (neurons, out_dim), jnp.float32, -bound2, bound2)
    b2 = jax.random.uniform(k4, (1, out_dim), jnp.float32, -bound2, bound2)
    return w1, b1, w2, b2


if __name__ == "__main__":
    in_dim, out_dim, neurons = 16, 8, 32
    batch = 8

    key = jax.random.PRNGKey(0)
    k_obs, k_params, k_big = jax.random.split(key, 3)
    obs = jax.random.normal(k_obs, (batch, in_dim), jnp.float32)
    w1, b1, w2, b2 = init_params(k_params, in_dim, out_dim, neurons)

    def ref_fn(x):
        return 7.0 * jnp.tanh(jnp.tanh(x @ w1 + b1) @ w2 + b2)

    # Small-batch (no-grid) path.
    out = jax.block_until_ready(tiny_tanh_nn(obs, w1, b1, w2, b2))
    assert out.shape == (batch, out_dim)
    assert jnp.allclose(out, ref_fn(obs), atol=1e-5, rtol=1e-5)

    # Batch-tiled grid path (the realistic large-B case from the perf review);
    # non-multiple batch exercises the pad-and-slice handling.
    big_batch = 1000
    obs_big = jax.random.normal(k_big, (big_batch, in_dim), jnp.float32)
    out_big = jax.block_until_ready(
        tiny_tanh_nn(obs_big, w1, b1, w2, b2, tile_b=256))
    assert out_big.shape == (big_batch, out_dim)
    assert jnp.allclose(out_big, ref_fn(obs_big), atol=1e-5, rtol=1e-5)

    print("KERNEL_OK")
</pallas_src>

<mosaic_0001>
module attributes {stable_mosaic.version = 11 : i64} {
  func.func @_fused_mlp_kernel(%arg0: memref<8x16xf32, #tpu.memory_space<vmem>>, %arg1: memref<64x32xf32, #tpu.memory_space<vmem>>, %arg2: memref<8x8xf32, #tpu.memory_space<vmem>>) attributes {dimension_semantics = [], scalar_prefetch = 0 : i64, scratch_operands = 0 : i64, tpu.core_type = #tpu.core_type<tc>} {
    %c0 = arith.constant 0 : index
    %c0_0 = arith.constant 0 : index
    %0 = vector.load %arg1[%c0, %c0_0] : memref<64x32xf32, #tpu.memory_space<vmem>>, vector<16x32xf32>
    %c16 = arith.constant 16 : index
    %c0_1 = arith.constant 0 : index
    %1 = vector.load %arg1[%c16, %c0_1] : memref<64x32xf32, #tpu.memory_space<vmem>>, vector<1x32xf32>
    %c24 = arith.constant 24 : index
    %c0_2 = arith.constant 0 : index
    %2 = vector.load %arg1[%c24, %c0_2] : memref<64x32xf32, #tpu.memory_space<vmem>>, vector<32x8xf32>
    %c56 = arith.constant 56 : index
    %c0_3 = arith.constant 0 : index
    %3 = vector.load %arg1[%c56, %c0_3] : memref<64x32xf32, #tpu.memory_space<vmem>>, vector<1x8xf32>
    %c0_4 = arith.constant 0 : index
    %c0_5 = arith.constant 0 : index
    %4 = vector.load %arg0[%c0_4, %c0_5] : memref<8x16xf32, #tpu.memory_space<vmem>>, vector<8x16xf32>
    %cst = arith.constant dense<0.000000e+00> : vector<8x32xf32>
    %5 = tpu.matmul %4, %0, %cst {dimension_numbers = #tpu.dot_dimension_numbers<[1], [0], [0], [1], [0, 0, 1, 1], [], []>} : vector<8x16xf32>, vector<16x32xf32>, vector<8x32xf32> -> vector<8x32xf32>
    %6 = vector.broadcast %1 : vector<1x32xf32> to vector<8x32xf32>
    %7 = arith.addf %5, %6 : vector<8x32xf32>
    %8 = math.tanh %7 : vector<8x32xf32>
    %cst_6 = arith.constant dense<0.000000e+00> : vector<8x8xf32>
    %9 = tpu.matmul %8, %2, %cst_6 {dimension_numbers = #tpu.dot_dimension_numbers<[1], [0], [0], [1], [0, 0, 1, 1], [], []>} : vector<8x32xf32>, vector<32x8xf32>, vector<8x8xf32> -> vector<8x8xf32>
    %10 = vector.broadcast %3 : vector<1x8xf32> to vector<8x8xf32>
    %11 = arith.addf %9, %10 : vector<8x8xf32>
    %12 = math.tanh %11 : vector<8x8xf32>
    %cst_7 = arith.constant 7.000000e+00 : f32
    %13 = vector.broadcast %cst_7 : f32 to vector<8x8xf32>
    %14 = arith.mulf %13, %12 : vector<8x8xf32>
    %c0_8 = arith.constant 0 : index
    %c0_9 = arith.constant 0 : index
    %15 = vector.load %arg2[%c0_8, %c0_9] : memref<8x8xf32, #tpu.memory_space<vmem>>, vector<8x8xf32>
    tpu.vector_store %arg2[%c0_8, %c0_9], %14 {strides = array<i32>} : memref<8x8xf32, #tpu.memory_space<vmem>>, vector<8x8xf32>,
    return
  }
}

</mosaic_0001>

<bundles_post_ra>
// kernel: tpu_custom_call.1
= control target key start
LH: loop header
LB: loop body
LE: loop exit
PB: predicated region body
PF: predicated region fallthrough
CT: control target
= control target key end

     0   :  { %v267_v2 = vmov 0.0|0.0   ;;  %vm268_vm0 = vmmov 0   ;;  %v269_v4 = vmov 0.0   ;;  %s325_s0 = inlined_call_operand.vmem [shape: f32[8,16], index: 0, kind: input, shape index: {}]   ;;  %s326_s1 = inlined_call_operand.vmem [shape: f32[64,32], index: 1, kind: input, shape index: {}]   ;;  %s327_s2 = inlined_call_operand.hbm [shape: f32[8,8], index: 2, kind: output, shape index: {}]  }
   0x1   :  { %v12_v0 = vld [vmem:[%s326_s1] sm:$0xff]  ;;  %v13_v1 = vld [vmem:[%s326_s1 + $0x8] sm:$0xff]  ;;  %226 = vmatprep.subr.bf16.mxu0 %v267_v2  ;;  %212 = vmatprep.mubr.msk.f32.mxu0 %vm268_vm0, %v269_v4 }
   0x2   :  { %v227_v3 = vpack.c.bf16 %v13_v1, %v12_v0 }
   0x3   :  { %7 = vsyncpa [#allocation3], 0  ;;  %229 = vmatprep.subr.bf16.mxu1 %v267_v2  ;;  %223 = vmatprep.mubr.msk.f32.mxu1 %vm268_vm0, %v269_v4  ;;  %v20_v5 = vld [vmem:[%s325_s0] sm:$0xff]  ;;  %vm25_vm1 = vcmask 130048   ;;  %v15_v6 = vld [vmem:[%s326_s1 + $0x18] sm:$0xff]  ;;  %vm104_vm2 = vcmask 261120  }
   0x4   :  { %228 = vmatpush3.bf16.msra.mxu0 %v227_v3  ;;  %v16_v7 = vld [vmem:[%s326_s1 + $0x20] sm:$0xff]  ;;  %v17_v8 = vld [vmem:[%s326_s1 + $0x28] sm:$0xff]  ;;  %v18_v10 = vld [vmem:[%s326_s1 + $0x30] sm:$0xff]  ;;  %s270_s26 = smov [#allocation2]   ;;  %vm180_vm3 = vcmask 64512  }
   0x5   :  { %v230_v9 = vpack.c.bf16 %v16_v7, %v15_v6  ;;  %v233_v11 = vpack.c.bf16 %v18_v10, %v17_v8  ;;  %v196_v12 = vld [vmem:[%s326_s1 + $0x10] ss:$0 sm:$0xff]  ;;  %v198_v17 = vld [vmem:[%s326_s1 + $0x38] ss:$0 sm:$0xff]  ;;  %s188_s27 = sshll.u32 %s270_s26, 4  ;;  %s189_s27 = int_to_ptr.vmem [resolvable:$true] %s188_s27 }
   0x6   :  { %s243_s28 = scalar_lea.vmem %s189_s27, 128  ;;  %p248_p1 = scmp.lt.s32.totalorder %s189_s27, %s189_s27 }
   0x7   :  { %213 = vmatmul.mubr.msk.f32.vlgmr.msra.gmra.mrb[0].mxu0 %vm25_vm1, %v20_v5  ;;  %231 = vmatpush3.bf16.msra.mxu1 %v230_v9  ;;  %p244_p0 = scmp.ne.s32.totalorder %s189_s27, %s243_s28  ;;  %p249_p2 = scmp.lt.s32.totalorder %s243_s28, %s243_s28 }
   0x8   :  { %232 = vmatprep.subr.bf16.mxu1 %v267_v2 }
   0x9   :  { %p250_p3 = por %p249_p2, %p248_p1 }
   0xb   :  { %234 = vmatpush3.bf16.msra.mxu1 %v233_v11  ;;  %p251_p4 = pnand %p250_p3, %p244_p0 }
  0xda   :  { %v95_v13 = vpop.f32.mrb[0].mxu0 }
  0xdb   :  { %v96_v14 = vadd.f32 %v196_v12, %v95_v13  ;;  %v214_v15 = vpop.f32.mrb[1].mxu0 }
  0xdd   :  { %239 = vtanh.f32 %v96_v14 }
  0xe7   :  { %v240_v16 = vpop.eup %239 }
  0xe8   :  { %224 = vmatmul.mubr.msk.f32.vlgmr.msra.gmra.mrb[0].mxu1 %vm104_vm2, %v240_v16 }
 0x1bb   :  { %v174_v18 = vpop.f32.mrb[0].mxu1 }
 0x1bc   :  { %v175_v19 = vadd.f32 %v198_v17, %v174_v18  ;;  %v225_v20 = vpop.f32.mrb[1].mxu1 }
 0x1be   :  { %241 = vtanh.f32 %v175_v19 }
 0x1c8   :  { %v242_v21 = vpop.eup %241 }
 0x1c9   :  { %v179_v22 = vmul.f32 7.0, %v242_v21 }
 0x1cb   :  { %181 = vst.msk [vmem:[#allocation2] sm:$0xff] %vm180_vm3, %v179_v22 }
 0x1cc   :  { %254 = shalt.err (!%p251_p4)
}
 0x1cd   :  { %s255_s30 = scalar_lea.hbm %s327_s2, 128 }
 0x1ce   :  { %p256_p5 = scmp.ne.s32.totalorder %s327_s2, %s255_s30  ;;  %p259_p6 = scmp.lt.u32.totalorder %s255_s30, %s327_s2 }
 0x1d0   :  { %p261_p7 = pnand %p259_p6, %p256_p5 }
 0x1d2   :  { %264 = shalt.err (!%p261_p7)
}
 0x1d3   :  { %191 = dma.vmem_to_hbm [thread:$0]  %s189_s27, 128, %s327_s2, [#allocation3]  }
 0x1d4   :  { %265 = dma.done.wait [#allocation3], 128  }
 0x1d5   :  { %266 = vsyncadd [#allocation3], 4294967168 }
 0x1d6   :  { %195 = vsyncpa [#allocation3], 1 }

</bundles_post_ra>
